<compile_context>
chip_gen: v7x
topology: tpu7x:2x2x1
jax: 0.10.0
libtpu: 0.0.40
codegen_flags: <defaults>
</compile_context>

<pallas_src>
import math

import jax
import jax.numpy as jnp
from jax import lax
from jax.experimental import pallas as pl
from jax.experimental.pallas import tpu as pltpu

KERNEL_SIZE = 3
SIGMA = 1.0  # fixed (see determinism note above)


def _gaussian_kernel_1d(kernel_size: int, sigma: float):
    """Matches torchvision.transforms.functional.gaussian_blur's 1-D kernel."""
    half = (kernel_size - 1) * 0.5
    xs = [(-half + i * (2.0 * half / (kernel_size - 1))) if kernel_size > 1 else 0.0
          for i in range(kernel_size)]
    pdf = [math.exp(-0.5 * (t / sigma) ** 2) for t in xs]
    s = sum(pdf)
    return [p / s for p in pdf]


def _make_blur_kernel(H: int, W: int, k1d):
    """Kernel body over a block of B flattened planes, shape (B, H*W)."""
    HW = H * W
    # Plain Python floats -> jaxpr literals (NOT captured array constants).
    k0 = float(k1d[0])          # == k1d[2] by symmetry of the gaussian
    k1 = float(k1d[1])

    def blur_kernel(x_ref, o_ref):
        x = x_ref[...].astype(jnp.float32)            # (B, H*W) lane-dense planes

        # Edge masks built once per step at (1, HW); broadcast over B in the
        # selects below (keeps VALU work and scratch independent of B).
        pos = lax.broadcasted_iota(jnp.int32, (1, HW), 1)
        col = pos % W
        first_row = pos < W
        last_row = pos >= (HW - W)
        first_col = col == 0
        last_col = col == (W - 1)

        # ---- vertical pass: neighbor = shift by one image row (W lanes); reflect edges
        up_wrap = pltpu.roll(x, W, 1)                 # [.., p] = x[.., p - W]
        dn_wrap = pltpu.roll(x, HW - W, 1)            # [.., p] = x[.., p + W]
        up = jnp.where(first_row, dn_wrap, up_wrap)   # reflect: row -1 -> row 1
        dn = jnp.where(last_row, up_wrap, dn_wrap)    # reflect: row H -> row H-2
        tmp = k1 * x + k0 * (up + dn)

        # ---- horizontal pass: neighbor = shift by one lane; reflect at row edges
        lf_wrap = pltpu.roll(tmp, 1, 1)               # [.., p] = tmp[.., p - 1]
        rt_wrap = pltpu.roll(tmp, HW - 1, 1)          # [.., p] = tmp[.., p + 1]
        lf = jnp.where(first_col, rt_wrap, lf_wrap)   # reflect: col -1 -> col 1
        rt = jnp.where(last_col, lf_wrap, rt_wrap)    # reflect: col W -> col W-2
        out = k1 * tmp + k0 * (lf + rt)

        o_ref[...] = out.astype(o_ref.dtype)

    return blur_kernel


def _choose_block_planes(nc: int, plane_bytes: int, target_bytes: int = 4 << 20) -> int:
    """How many image planes per block.

    ~4 MiB blocks (per-step overhead << DMA time on v5e/v6e/v7x); no minimum
    grid-length clamp, but inputs >1 MiB are split into >=2 blocks so the
    "parallel" grid axis can shard across v7x's two TensorCores.
    """
    total = nc * plane_bytes
    if nc <= 8 or total <= (1 << 20):
        return nc                                     # tiny input: one block
    b = max(8, (target_bytes // max(plane_bytes, 1)) // 8 * 8)
    if b >= nc:
        # Everything would fit in one block: split into 2 for megacore sharding.
        b = max(8, (((nc + 1) // 2 + 7) // 8) * 8)
    return min(b, nc)


def gaussian_blur(x: jax.Array) -> jax.Array:
    """3x3 Gaussian blur (sigma=1.0), reflect padding, depthwise over NCHW."""
    N, C, H, W = x.shape
    if H < 2 or W < 2:
        # TODO(synk): torchvision handles 1-pixel spatial dims; reflect halo here needs >= 2.
        raise ValueError("gaussian_blur requires H >= 2 and W >= 2")
    # TODO(synk): integer dtypes (uint8) are truncated on the final astype;
    # torchvision rounds, so expect off-by-one on integer inputs.

    NC, HW = N * C, H * W
    itemsize = jnp.dtype(x.dtype).itemsize
    xf = x.reshape(NC, HW)                            # free row-major view, no pre-pad

    B = _choose_block_planes(NC, HW * itemsize)
    grid = (pl.cdiv(NC, B),)
    kernel = _make_blur_kernel(H, W, _gaussian_kernel_1d(KERNEL_SIZE, SIGMA))

    out = pl.pallas_call(
        kernel,
        out_shape=jax.ShapeDtypeStruct((NC, HW), x.dtype),
        grid_spec=pltpu.PrefetchScalarGridSpec(
            num_scalar_prefetch=0,
            grid=grid,
            in_specs=[pl.BlockSpec((B, HW), lambda i: (i, 0))],
            out_specs=pl.BlockSpec((B, HW), lambda i: (i, 0)),
        ),
        compiler_params=pltpu.CompilerParams(
            dimension_semantics=("parallel",),
            vmem_limit_bytes=48 << 20,                # fits v7x 64 MiB; plenty on v5e/v6e
        ),
        cost_estimate=pl.CostEstimate(
            flops=12 * NC * HW,
            transcendentals=0,
            bytes_accessed=2 * NC * HW * itemsize,
        ),
    )(xf)

    return out.reshape(N, C, H, W)


def my_gaussian_blur_forward(*args):
    """Semantics of MyGausssianBlur.forward: blur args[0], pass the rest through."""
    return [gaussian_blur(args[idx]) if idx == 0 else args[idx]
            for idx in range(len(args))]


def _reference_blur(x):
    """Pure-JAX reference: full 2-D 3x3 gaussian on a reflect-padded image."""
    k1d = jnp.asarray(_gaussian_kernel_1d(KERNEL_SIZE, SIGMA), dtype=jnp.float32)
    w2d = jnp.outer(k1d, k1d)
    pad = KERNEL_SIZE // 2
    xp = jnp.pad(x, ((0, 0), (0, 0), (pad, pad), (pad, pad)), mode="reflect")
    N, C, H, W = x.shape
    acc = jnp.zeros_like(x, dtype=jnp.float32)
    for di in range(KERNEL_SIZE):
        for dj in range(KERNEL_SIZE):
            acc = acc + w2d[di, dj] * xp[:, :, di:di + H, dj:dj + W].astype(jnp.float32)
    return acc.astype(x.dtype)


if __name__ == "__main__":
    key = jax.random.PRNGKey(0)
    k0, k1 = jax.random.split(key)
    x = jax.random.normal(k0, (2, 4, 16, 16), dtype=jnp.float32)   # args[0]: blurred
    y = jax.random.normal(k1, (2, 3, 8, 8), dtype=jnp.float32)     # args[1]: passthrough

    outs = my_gaussian_blur_forward(x, y)
    blurred = jax.block_until_ready(outs[0])
    passthrough = jax.block_until_ready(outs[1])

    ref = _reference_blur(x)
    assert blurred.shape == x.shape and blurred.dtype == x.dtype
    assert jnp.allclose(blurred, ref, atol=1e-5, rtol=1e-5)
    assert jnp.array_equal(passthrough, y)

    print("KERNEL_OK")
</pallas_src>

<mosaic_0001>
module attributes {stable_mosaic.version = 11 : i64} {
  func.func @blur_kernel(%arg0: i32, %arg1: memref<8x256xf32, #tpu.memory_space<vmem>>, %arg2: memref<8x256xf32, #tpu.memory_space<vmem>>) attributes {dimension_semantics = [#tpu.dimension_semantics<parallel>], iteration_bounds = array<i64: 1>, scalar_prefetch = 0 : i64, scratch_operands = 0 : i64, tpu.core_type = #tpu.core_type<tc>, window_params = [{transform_indices = @transform_0, window_bounds = array<i64: 8, 256>}, {transform_indices = @transform_1, window_bounds = array<i64: 8, 256>}]} {
    %c0 = arith.constant 0 : index
    %c0_0 = arith.constant 0 : index
    %0 = vector.load %arg1[%c0, %c0_0] : memref<8x256xf32, #tpu.memory_space<vmem>>, vector<8x256xf32>
    %1 = tpu.iota {dimensions = array<i32: 1>} : vector<1x256xi32>
    %c16_i32 = arith.constant 16 : i32
    %c0_i32 = arith.constant 0 : i32
    %2 = arith.cmpi eq, %c16_i32, %c0_i32 : i32
    %c1_i32 = arith.constant 1 : i32
    %3 = arith.select %2, %c1_i32, %c16_i32 : i32
    %4 = vector.broadcast %3 : i32 to vector<1x256xi32>
    %5 = arith.remsi %1, %4 : vector<1x256xi32>
    %c0_i32_1 = arith.constant 0 : i32
    %6 = vector.broadcast %c0_i32_1 : i32 to vector<1x256xi32>
    %7 = arith.cmpi ne, %5, %6 : vector<1x256xi32>
    %c0_i32_2 = arith.constant 0 : i32
    %8 = vector.broadcast %c0_i32_2 : i32 to vector<1x256xi32>
    %9 = arith.cmpi slt, %5, %8 : vector<1x256xi32>
    %c0_i32_3 = arith.constant 0 : i32
    %10 = arith.cmpi slt, %3, %c0_i32_3 : i32
    %11 = vector.broadcast %10 : i1 to vector<1x256xi1>
    %12 = vector.broadcast %11 : vector<1x256xi1> to vector<1x256xi1>
    %13 = arith.xori %9, %12 : vector<1x256xi1>
    %14 = arith.andi %13, %7 : vector<1x256xi1>
    %15 = vector.broadcast %3 : i32 to vector<1x256xi32>
    %16 = arith.addi %5, %15 : vector<1x256xi32>
    %17 = arith.select %14, %16, %5 : vector<1x256xi1>, vector<1x256xi32>
    %c16_i32_4 = arith.constant 16 : i32
    %18 = vector.broadcast %c16_i32_4 : i32 to vector<1x256xi32>
    %19 = arith.cmpi slt, %1, %18 : vector<1x256xi32>
    %c240_i32 = arith.constant 240 : i32
    %20 = vector.broadcast %c240_i32 : i32 to vector<1x256xi32>
    %21 = arith.cmpi sge, %1, %20 : vector<1x256xi32>
    %c0_i32_5 = arith.constant 0 : i32
    %22 = vector.broadcast %c0_i32_5 : i32 to vector<1x256xi32>
    %23 = arith.cmpi eq, %17, %22 : vector<1x256xi32>
    %c15_i32 = arith.constant 15 : i32
    %24 = vector.broadcast %c15_i32 : i32 to vector<1x256xi32>
    %25 = arith.cmpi eq, %17, %24 : vector<1x256xi32>
    %c16_i32_6 = arith.constant 16 : i32
    %26 = tpu.dynamic_rotate %0 by %c16_i32_6 dim 1 : vector<8x256xf32>, i32 -> vector<8x256xf32>
    %c240_i32_7 = arith.constant 240 : i32
    %27 = tpu.dynamic_rotate %0 by %c240_i32_7 dim 1 : vector<8x256xf32>, i32 -> vector<8x256xf32>
    %28 = vector.shape_cast %19 : vector<1x256xi1> to vector<1x256xi1>
    %29 = vector.broadcast %28 : vector<1x256xi1> to vector<8x256xi1>
    %30 = arith.select %29, %27, %26 : vector<8x256xi1>, vector<8x256xf32>
    %31 = vector.shape_cast %21 : vector<1x256xi1> to vector<1x256xi1>
    %32 = vector.broadcast %31 : vector<1x256xi1> to vector<8x256xi1>
    %33 = arith.select %32, %26, %27 : vector<8x256xi1>, vector<8x256xf32>
    %cst = arith.constant 0.451862752 : f32
    %34 = vector.broadcast %cst : f32 to vector<8x256xf32>
    %35 = arith.mulf %34, %0 : vector<8x256xf32>
    %36 = arith.addf %30, %33 : vector<8x256xf32>
    %cst_8 = arith.constant 0.274068624 : f32
    %37 = vector.broadcast %cst_8 : f32 to vector<8x256xf32>
    %38 = arith.mulf %37, %36 : vector<8x256xf32>
    %39 = arith.addf %35, %38 : vector<8x256xf32>
    %c1_i32_9 = arith.constant 1 : i32
    %40 = tpu.dynamic_rotate %39 by %c1_i32_9 dim 1 : vector<8x256xf32>, i32 -> vector<8x256xf32>
    %c255_i32 = arith.constant 255 : i32
    %41 = tpu.dynamic_rotate %39 by %c255_i32 dim 1 : vector<8x256xf32>, i32 -> vector<8x256xf32>
    %42 = vector.shape_cast %23 : vector<1x256xi1> to vector<1x256xi1>
    %43 = vector.broadcast %42 : vector<1x256xi1> to vector<8x256xi1>
    %44 = arith.select %43, %41, %40 : vector<8x256xi1>, vector<8x256xf32>
    %45 = vector.shape_cast %25 : vector<1x256xi1> to vector<1x256xi1>
    %46 = vector.broadcast %45 : vector<1x256xi1> to vector<8x256xi1>
    %47 = arith.select %46, %40, %41 : vector<8x256xi1>, vector<8x256xf32>
    %cst_10 = arith.constant 0.451862752 : f32
    %48 = vector.broadcast %cst_10 : f32 to vector<8x256xf32>
    %49 = arith.mulf %48, %39 : vector<8x256xf32>
    %50 = arith.addf %44, %47 : vector<8x256xf32>
    %cst_11 = arith.constant 0.274068624 : f32
    %51 = vector.broadcast %cst_11 : f32 to vector<8x256xf32>
    %52 = arith.mulf %51, %50 : vector<8x256xf32>
    %53 = arith.addf %49, %52 : vector<8x256xf32>
    %c0_12 = arith.constant 0 : index
    %c0_13 = arith.constant 0 : index
    %54 = vector.load %arg2[%c0_12, %c0_13] : memref<8x256xf32, #tpu.memory_space<vmem>>, vector<8x256xf32>
    tpu.vector_store %arg2[%c0_12, %c0_13], %53 {strides = array<i32>} : memref<8x256xf32, #tpu.memory_space<vmem>>, vector<8x256xf32>,
    return
  }
  func.func @transform_0(%arg0: i32) -> (i32, i32) {
    %c0_i32 = arith.constant 0 : i32
    %c0_i32_0 = arith.constant 0 : i32
    return %arg0, %c0_i32 : i32, i32
  }
  func.func @transform_1(%arg0: i32) -> (i32, i32) {
    %c0_i32 = arith.constant 0 : i32
    %c0_i32_0 = arith.constant 0 : i32
    return %arg0, %c0_i32 : i32, i32
  }
}

</mosaic_0001>

<bundles_post_ra>
// kernel: tpu_custom_call.1
= control target key start
LH: loop header
LB: loop body
LE: loop exit
PB: predicated region body
PF: predicated region fallthrough
CT: control target
= control target key end

     0   :  { %6 = vsyncpa [#allocation3], 0  ;;  %s236_s0 = inlined_call_operand.hbm [shape: f32[8,256], index: 0, kind: input, shape index: {}]   ;;  %s237_s1 = inlined_call_operand.hbm [shape: f32[8,256], index: 1, kind: output, shape index: {}]  }
   0x1   :  { %7 = vsyncpa [#allocation4], 0  ;;  %s196_s6 = smov [#allocation2]   ;;  %s148_s10 = scalar_lea.hbm %s236_s0, 256 }
   0x2   :  { %s14_s7 = sshll.u32 %s196_s6, 4  ;;  %p149_p0 = scmp.ne.s32.totalorder %s236_s0, %s148_s10  ;;  %s15_s7 = int_to_ptr.vmem [resolvable:$true] %s14_s7 }
   0x3   :  { %p152_p1 = scmp.lt.u32.totalorder %s148_s10, %s236_s0 }
   0x5   :  { %p154_p2 = pnand %p152_p1, %p149_p0 }
   0x7   :  { %157 = shalt.err (!%p154_p2)
}
   0x8   :  { %s158_s15 = scalar_lea.vmem %s15_s7, 256  ;;  %p163_p4 = scmp.lt.s32.totalorder %s15_s7, %s15_s7 }
   0x9   :  { %p159_p3 = scmp.ne.s32.totalorder %s15_s7, %s158_s15  ;;  %p164_p5 = scmp.lt.s32.totalorder %s158_s15, %s158_s15 }
   0xb   :  { %p165_p6 = por %p164_p5, %p163_p4 }
   0xd   :  { %p166_p7 = pnand %p165_p6, %p159_p3 }
   0xf   :  { %169 = shalt.err (!%p166_p7)
}
  0x10   :  { %17 = dma.hbm_to_vmem [thread:$0]  %s236_s0, 256, %s15_s7, [#allocation3]  }
  0x11   :  { %192 = dma.done.wait [#allocation3], 256  }
  0x12   :  { %193 = vsyncadd [#allocation3], 4294967040  ;;  %v21_v0 = vld [vmem:[#allocation2] sm:$0xff]  ;;  %s197_s18 = smov 112   ;;  %s198_s19 = smov 16   ;;  %v22_v1 = vld [vmem:[#allocation2 + $0x8] sm:$0xff]  ;;  %v23_v2 = vlaneseq }
  0x13   :  { %64 = vrot.lane.b32.xlu1 %v21_v0, %s197_s18  ;;  %58 = vrot.lane.b32.xlu0 %v21_v0, %s198_s19  ;;  %v83_v15 = vmul.f32 0.45186275, %v21_v0  ;;  %v84_v16 = vmul.f32 0.45186275, %v22_v1  ;;  %s199_s0 = smov 1   ;;  %s200_s20 = smov 127  }
  0x14   :  { %v24_v3 = vand.u32 127, %v23_v2  ;;  %s201_s21 = smov [#allocation5]  }
  0x15   :  { %s133_s22 = sshll.u32 %s201_s21, 4  ;;  %s134_s22 = int_to_ptr.vmem [resolvable:$true] %s133_s22 }
  0x16   :  { %v25_v4 = vadd.s32 128, %v24_v3  ;;  %vm68_vm0 = vcmp.lt.s32.totalorder %v24_v3, 112  ;;  %vm50_vm1 = vcmp.lt.s32.totalorder %v24_v3, 16  ;;  %v30_v23 = vand.u32 15, %v24_v3  ;;  %s170_s23 = scalar_lea.vmem %s134_s22, 256  ;;  %p175_p9 = scmp.lt.s32.totalorder %s134_s22, %s134_s22 }
  0x17   :  { %66 = vrot.lane.b32.xlu1 %v22_v1, %s197_s18  ;;  %60 = vrot.lane.b32.xlu0 %v22_v1, %s198_s19  ;;  %vm95_vm3 = vcmp.lt.s32.totalorder %v24_v3, 1  ;;  %vm102_vm4 = vcmp.lt.s32.totalorder %v24_v3, 127  ;;  %p171_p8 = scmp.ne.s32.totalorder %s134_s22, %s170_s23  ;;  %p176_p10 = scmp.lt.s32.totalorder %s170_s23, %s170_s23 }
  0x18   :  { %vm53_vm2 = vcmp.ge.s32.totalorder %v25_v4, 240  ;;  %v37_v24 = vand.u32 15, %v25_v4  ;;  %vm54_vm5 = vcmp.eq.s32.totalorder %v30_v23, 0  ;;  %vm56_vm7 = vcmp.eq.s32.totalorder %v30_v23, 15 }
  0x19   :  { %p177_p11 = por %p176_p10, %p175_p9 }
  0x1a   :  { %vm55_vm6 = vcmp.eq.s32.totalorder %v37_v24, 0  ;;  %vm57_vm8 = vcmp.eq.s32.totalorder %v37_v24, 15 }
  0x1b   :  { %p178_p12 = pnand %p177_p11, %p171_p8 }
  0x85   :  { %v65_v5 = vpop.permute.xlu1 %64  ;;  %v59_v6 = vpop.permute.xlu0 %58 }
  0x89   :  { %v67_v7 = vpop.permute.xlu1 %66  ;;  %v61_v8 = vpop.permute.xlu0 %60 }
  0x8a   :  { %v69_v9 = vsel %vm68_vm0, %v65_v5, %v67_v7  ;;  %v70_v10 = vsel %vm68_vm0, %v67_v7, %v65_v5  ;;  %v62_v11 = vsel %vm50_vm1, %v59_v6, %v61_v8  ;;  %v63_v12 = vsel %vm50_vm1, %v61_v8, %v59_v6 }
  0x8b   :  { %v75_v13 = vsel %vm50_vm1, %v69_v9, %v63_v12  ;;  %v82_v14 = vsel %vm53_vm2, %v62_v11, %v70_v10 }
  0x8c   :  { %v85_v17 = vadd.f32 %v75_v13, %v69_v9  ;;  %v86_v18 = vadd.f32 %v82_v14, %v62_v11 }
  0x8e   :  { %v87_v19 = vmul.f32 0.27406862, %v85_v17  ;;  %v88_v20 = vmul.f32 0.27406862, %v86_v18 }
  0x90   :  { %v90_v21 = vadd.f32 %v88_v20, %v84_v16  ;;  %v89_v22 = vadd.f32 %v87_v19, %v83_v15 }
  0x92   :  { %93 = vrot.lane.b32.xlu1 %v90_v21, %s199_s0  ;;  %91 = vrot.lane.b32.xlu0 %v89_v22, %s199_s0  ;;  %v117_v39 = vmul.f32 0.45186275, %v89_v22  ;;  %v118_v42 = vmul.f32 0.45186275, %v90_v21 }
  0x96   :  { %100 = vrot.lane.b32.xlu1 %v90_v21, %s200_s20  ;;  %98 = vrot.lane.b32.xlu0 %v89_v22, %s200_s20 }
 0x104   :  { %v94_v25 = vpop.permute.xlu1 %93  ;;  %v92_v26 = vpop.permute.xlu0 %91 }
 0x105   :  { %v96_v29 = vsel %vm95_vm3, %v92_v26, %v94_v25  ;;  %v97_v30 = vsel %vm95_vm3, %v94_v25, %v92_v26 }
 0x108   :  { %v101_v27 = vpop.permute.xlu1 %100  ;;  %v99_v28 = vpop.permute.xlu0 %98 }
 0x109   :  { %v103_v31 = vsel %vm102_vm4, %v99_v28, %v101_v27  ;;  %v104_v32 = vsel %vm102_vm4, %v101_v27, %v99_v28 }
 0x10a   :  { %v109_v33 = vsel %vm54_vm5, %v103_v31, %v97_v30  ;;  %v110_v34 = vsel %vm55_vm6, %v104_v32, %v96_v29  ;;  %v115_v35 = vsel %vm56_vm7, %v97_v30, %v103_v31  ;;  %v116_v36 = vsel %vm57_vm8, %v96_v29, %v104_v32 }
 0x10b   :  { %v119_v37 = vadd.f32 %v115_v35, %v109_v33  ;;  %v120_v38 = vadd.f32 %v116_v36, %v110_v34 }
 0x10d   :  { %v121_v40 = vmul.f32 0.27406862, %v119_v37  ;;  %v122_v41 = vmul.f32 0.27406862, %v120_v38 }
 0x10f   :  { %v123_v43 = vadd.f32 %v121_v40, %v117_v39  ;;  %v124_v44 = vadd.f32 %v122_v41, %v118_v42 }
 0x111   :  { %125 = vst [vmem:[#allocation5] sm:$0xff] %v123_v43  ;;  %126 = vst [vmem:[#allocation5 + $0x8] sm:$0xff] %v124_v44 }
 0x112   :  { %181 = shalt.err (!%p178_p12)
}
 0x113   :  { %s182_s26 = scalar_lea.hbm %s237_s1, 256 }
 0x114   :  { %p183_p13 = scmp.ne.s32.totalorder %s237_s1, %s182_s26  ;;  %p186_p0 = scmp.lt.u32.totalorder %s182_s26, %s237_s1 }
 0x116   :  { %p188_p1 = pnand %p186_p0, %p183_p13 }
 0x118   :  { %191 = shalt.err (!%p188_p1)
}
 0x119   :  { %136 = dma.vmem_to_hbm [thread:$0]  %s134_s22, 256, %s237_s1, [#allocation4]  }
 0x11a   :  { %194 = dma.done.wait [#allocation4], 256  }
 0x11b   :  { %195 = vsyncadd [#allocation4], 4294967040 }
 0x11c   :  { %140 = vsyncpa [#allocation3], 1 }
 0x11d   :  { %141 = vsyncpa [#allocation4], 1 }

</bundles_post_ra>
